<compile_context>
chip_gen: v6e
topology: v6e:2x2x1
jax: 0.10.0
libtpu: 0.0.40
codegen_flags: <defaults>
</compile_context>

<pallas_src>
import jax
import jax.numpy as jnp
from jax.experimental import pallas as pl
from jax.experimental.pallas import tpu as pltpu


def _patch_embed_kernel(p_ref, w_ref, b_ref, o_ref):
    # p_ref: (tm, K) patch tile; w_ref: (K, E); b_ref: (1, E); o_ref: (tm, E)
    acc = jnp.dot(p_ref[...], w_ref[...], preferred_element_type=jnp.float32)
    o_ref[...] = (acc + b_ref[...].astype(jnp.float32)).astype(o_ref.dtype)


def patch_embed(x, weight, bias, patch_size, tm=512):
    """PatchEmbed forward.

    x:      (B, C, H, W)
    weight: (E, C, P, P)  -- Conv2d weight, kernel_size == stride == P
    bias:   (E,)
    Returns (B, num_patches, E) with num_patches = (H//P)*(W//P).
    """
    B, C, H, W = x.shape
    P = patch_size
    E = weight.shape[0]
    Gh, Gw = H // P, W // P
    M = B * Gh * Gw
    K = C * P * P

    # im2col: (B,C,H,W) -> (B,Gh,Gw,C,P,P) -> (M, K). Single HBM rearrangement pass.
    patches = (
        x.reshape(B, C, Gh, P, Gw, P)
        .transpose(0, 2, 4, 1, 3, 5)
        .reshape(M, K)
    )
    wmat = weight.reshape(E, K).T  # (K, E): embed_dim on the lane axis (lane-dense output)
    b2d = bias.reshape(1, E)

    # Adaptive row tile: multiple of 8 sublanes, capped at the problem size.
    tm_eff = min(tm, max(8, ((M + 7) // 8) * 8))
    grid = (pl.cdiv(M, tm_eff),)

    out = pl.pallas_call(
        _patch_embed_kernel,
        out_shape=jax.ShapeDtypeStruct((M, E), x.dtype),
        grid_spec=pltpu.PrefetchScalarGridSpec(
            num_scalar_prefetch=0,
            grid=grid,
            in_specs=[
                pl.BlockSpec((tm_eff, K), lambda i: (i, 0)),  # patch rows (tiled)
                pl.BlockSpec((K, E), lambda i: (0, 0)),       # weight (grid-invariant, resident)
                pl.BlockSpec((1, E), lambda i: (0, 0)),       # bias   (grid-invariant, resident)
            ],
            out_specs=pl.BlockSpec((tm_eff, E), lambda i: (i, 0)),
        ),
        compiler_params=pltpu.CompilerParams(
            dimension_semantics=("parallel",),
        ),
    )(patches, wmat, b2d)

    # flatten=True path of the module: (B, num_patches, E). norm = Identity.
    return out.reshape(B, Gh * Gw, E)


def patch_embed_ref(x, weight, bias, patch_size):
    """Pure-JAX reference matching the PyTorch forward (Conv2d + flatten + transpose)."""
    out = jax.lax.conv_general_dilated(
        x, weight,
        window_strides=(patch_size, patch_size),
        padding="VALID",
        dimension_numbers=("NCHW", "OIHW", "NCHW"),
    )
    out = out + bias[None, :, None, None]
    B, E, Gh, Gw = out.shape
    return out.reshape(B, E, Gh * Gw).transpose(0, 2, 1)


if __name__ == "__main__":
    key = jax.random.PRNGKey(0)
    kx, kw, kb = jax.random.split(key, 3)

    # Small shapes consistent with the module: img 16x16, patch 4, 3 channels,
    # embed_dim 128 (keeps the output lane axis a multiple of 128).
    B, C, H, W = 2, 3, 16, 16
    P = 4
    E = 128

    x = jax.random.normal(kx, (B, C, H, W), dtype=jnp.float32)
    weight = 0.05 * jax.random.normal(kw, (E, C, P, P), dtype=jnp.float32)
    bias = 0.1 * jax.random.normal(kb, (E,), dtype=jnp.float32)

    out = patch_embed(x, weight, bias, patch_size=P)
    out = jax.block_until_ready(out)

    ref = patch_embed_ref(x, weight, bias, patch_size=P)
    num_patches = (H // P) * (W // P)
    assert out.shape == (B, num_patches, E), out.shape
    assert jnp.allclose(out, ref, atol=1e-4, rtol=1e-4), "mismatch vs reference"

    # TODO(synk): optional norm_layer (module default is None -> Identity) is not fused here.
    print("KERNEL_OK")
</pallas_src>

<mosaic_0001>
module attributes {stable_mosaic.version = 11 : i64} {
  func.func @_patch_embed_kernel(%arg0: i32, %arg1: memref<32x48xf32, #tpu.memory_space<vmem>>, %arg2: memref<48x128xf32, #tpu.memory_space<vmem>>, %arg3: memref<1x128xf32, #tpu.memory_space<vmem>>, %arg4: memref<32x128xf32, #tpu.memory_space<vmem>>) attributes {dimension_semantics = [#tpu.dimension_semantics<parallel>], iteration_bounds = array<i64: 1>, scalar_prefetch = 0 : i64, scratch_operands = 0 : i64, tpu.core_type = #tpu.core_type<tc>, window_params = [{transform_indices = @transform_0, window_bounds = array<i64: 32, 48>}, {pipeline_mode = #tpu.pipeline_mode<synchronous>, transform_indices = @transform_1, window_bounds = array<i64: 48, 128>}, {pipeline_mode = #tpu.pipeline_mode<synchronous>, transform_indices = @transform_2, window_bounds = array<i64: 1, 128>}, {transform_indices = @transform_3, window_bounds = array<i64: 32, 128>}]} {
    %c0 = arith.constant 0 : index
    %c0_0 = arith.constant 0 : index
    %0 = vector.load %arg1[%c0, %c0_0] : memref<32x48xf32, #tpu.memory_space<vmem>>, vector<32x48xf32>
    %c0_1 = arith.constant 0 : index
    %c0_2 = arith.constant 0 : index
    %1 = vector.load %arg2[%c0_1, %c0_2] : memref<48x128xf32, #tpu.memory_space<vmem>>, vector<48x128xf32>
    %cst = arith.constant dense<0.000000e+00> : vector<32x128xf32>
    %2 = tpu.matmul %0, %1, %cst {dimension_numbers = #tpu.dot_dimension_numbers<[1], [0], [0], [1], [0, 0, 1, 1], [], []>} : vector<32x48xf32>, vector<48x128xf32>, vector<32x128xf32> -> vector<32x128xf32>
    %c0_3 = arith.constant 0 : index
    %c0_4 = arith.constant 0 : index
    %3 = vector.load %arg3[%c0_3, %c0_4] : memref<1x128xf32, #tpu.memory_space<vmem>>, vector<1x128xf32>
    %4 = vector.broadcast %3 : vector<1x128xf32> to vector<32x128xf32>
    %5 = arith.addf %2, %4 : vector<32x128xf32>
    %c0_5 = arith.constant 0 : index
    %c0_6 = arith.constant 0 : index
    %6 = vector.load %arg4[%c0_5, %c0_6] : memref<32x128xf32, #tpu.memory_space<vmem>>, vector<32x128xf32>
    tpu.vector_store %arg4[%c0_5, %c0_6], %5 {strides = array<i32>} : memref<32x128xf32, #tpu.memory_space<vmem>>, vector<32x128xf32>,
    return
  }
  func.func @transform_0(%arg0: i32) -> (i32, i32) {
    %c0_i32 = arith.constant 0 : i32
    %c0_i32_0 = arith.constant 0 : i32
    return %arg0, %c0_i32 : i32, i32
  }
  func.func @transform_1(%arg0: i32) -> (i32, i32) {
    %c0_i32 = arith.constant 0 : i32
    %c0_i32_0 = arith.constant 0 : i32
    %c0_i32_1 = arith.constant 0 : i32
    return %c0_i32, %c0_i32_0 : i32, i32
  }
  func.func @transform_2(%arg0: i32) -> (i32, i32) {
    %c0_i32 = arith.constant 0 : i32
    %c0_i32_0 = arith.constant 0 : i32
    %c0_i32_1 = arith.constant 0 : i32
    return %c0_i32, %c0_i32_0 : i32, i32
  }
  func.func @transform_3(%arg0: i32) -> (i32, i32) {
    %c0_i32 = arith.constant 0 : i32
    %c0_i32_0 = arith.constant 0 : i32
    return %arg0, %c0_i32 : i32, i32
  }
}

</mosaic_0001>

<bundles_post_ra>
// kernel: tpu_custom_call.1
= control target key start
LH: loop header
LB: loop body
LE: loop exit
PB: predicated region body
PF: predicated region fallthrough
CT: control target
= control target key end

     0   :  { %8 = vsyncpa [#allocation3], 0  ;;  %s342_s0 = inlined_call_operand.hbm [shape: f32[32,48], index: 0, kind: input, shape index: {}]   ;;  %s343_s1 = inlined_call_operand.hbm [shape: f32[48,128], index: 1, kind: input, shape index: {}]   ;;  %s344_s2 = inlined_call_operand.vmem [shape: f32[1,128], index: 2, kind: input, shape index: {}]   ;;  %s345_s3 = inlined_call_operand.hbm [shape: f32[32,128], index: 3, kind: output, shape index: {}]  }
   0x1   :  { %9 = vsyncpa [#allocation6], 0 }
   0x2   :  { %10 = vsyncpa [#allocation4], 0  ;;  %s296_s12 = smov [#allocation2]  }
   0x3   :  { %s16_s13 = sshll.u32 %s296_s12, 4  ;;  %s17_s13 = int_to_ptr.vmem [resolvable:$true] %s16_s13 }
   0x4   :  { %s238_s14 = scalar_lea.vmem %s17_s13, 512  ;;  %p243_p1 = scmp.lt.s32.totalorder %s17_s13, %s17_s13 }
   0x5   :  { %p239_p0 = scmp.ne.s32.totalorder %s17_s13, %s238_s14  ;;  %p244_p2 = scmp.lt.s32.totalorder %s238_s14, %s238_s14 }
   0x7   :  { %p245_p3 = por %p244_p2, %p243_p1 }
   0x9   :  { %p246_p4 = pnand %p245_p3, %p239_p0 }
   0xb   :  { %249 = shalt.err (!%p246_p4)
}
   0xc   :  { %s297_s15 = smov 128   ;;  %s298_s16 = smov 8  }
   0xd   :  { %22 = dma.hbm_to_vmem [thread:$0]  %s342_s0, 512, %s17_s13, [#allocation3], %s297_s15, %s297_s15, %s298_s16  }
   0xe   :  { %s299_s19 = smov [#allocation5]  }
   0xf   :  { %s28_s20 = sshll.u32 %s299_s19, 4  ;;  %s29_s20 = int_to_ptr.vmem [resolvable:$true] %s28_s20 }
  0x10   :  { %s258_s21 = scalar_lea.vmem %s29_s20, 768  ;;  %p263_p6 = scmp.lt.s32.totalorder %s29_s20, %s29_s20 }
  0x11   :  { %p259_p5 = scmp.ne.s32.totalorder %s29_s20, %s258_s21  ;;  %p264_p7 = scmp.lt.s32.totalorder %s258_s21, %s258_s21 }
  0x13   :  { %p265_p8 = por %p264_p7, %p263_p6 }
  0x15   :  { %p266_p9 = pnand %p265_p8, %p259_p5 }
  0x17   :  { %269 = shalt.err (!%p266_p9)
}
  0x18   :  { %34 = dma.hbm_to_vmem [thread:$0]  %s343_s1, 768, %s29_s20, [#allocation6], %s297_s15, %s297_s15, %s298_s16  }
  0x19   :  { %290 = dma.done.wait [#allocation3], 512  }
  0x1a   :  { %291 = vsyncadd [#allocation3], 4294966784 }
  0x1b   :  { %292 = dma.done.wait [#allocation6], 768  }
  0x1c   :  { %293 = vsyncadd [#allocation6], 4294966528  ;;  %v52_v0 = vld [vmem:[#allocation5 + $0x28] sm:$0xff]  ;;  %v51_v1 = vld [vmem:[#allocation5 + $0x20] sm:$0xff]  ;;  %vm60_vm0 = vcmask 392192   ;;  %s300_s24 = smov [#allocation7]  }
  0x1d   :  { %195 = vmatprep.subr.mxu0 %v52_v0  ;;  %213 = vmatprep.subr.mxu1 %v52_v0  ;;  %v50_v2 = vld [vmem:[#allocation5 + $0x18] sm:$0xff]  ;;  %v49_v3 = vld [vmem:[#allocation5 + $0x10] sm:$0xff]  ;;  %v48_v4 = vld [vmem:[#allocation5 + $0x8] sm:$0xff]  ;;  %s167_s25 = sshll.u32 %s300_s24, 4  ;;  %s168_s25 = int_to_ptr.vmem [resolvable:$true] %s167_s25 }
  0x1e   :  { %196 = vmatpush3.msra.mxu0 %v52_v0  ;;  %219 = vmatpush3.msra.mxu1 %v52_v0  ;;  %v47_v5 = vld [vmem:[#allocation5] sm:$0xff]  ;;  %v45_v7 = vld [vmem:[#allocation2 + $0x10] sm:$0xff]  ;;  %v44_v8 = vld [vmem:[#allocation2 + $0x8] sm:$0xff]  ;;  %s270_s26 = scalar_lea.vmem %s168_s25, 512  ;;  %p275_p11 = scmp.lt.s32.totalorder %s168_s25, %s168_s25 }
  0x1f   :  { %197 = vmatprep.subr.mxu0 %v51_v1  ;;  %214 = vmatprep.subr.mxu1 %v51_v1  ;;  %v43_v6 = vld [vmem:[#allocation2] sm:$0xff]  ;;  %v46_v9 = vld [vmem:[#allocation2 + $0x18] sm:$0xff]  ;;  %p271_p10 = scmp.ne.s32.totalorder %s168_s25, %s270_s26  ;;  %p276_p12 = scmp.lt.s32.totalorder %s270_s26, %s270_s26 }
  0x20   :  { %198 = vmatpush3.msra.mxu0 %v51_v1  ;;  %220 = vmatpush3.msra.mxu1 %v51_v1  ;;  %v180_v10 = vld [vmem:[%s344_s2] ss:$0 sm:$0xff] }
  0x21   :  { %199 = vmatprep.subr.mxu0 %v50_v2  ;;  %215 = vmatprep.subr.mxu1 %v50_v2  ;;  %p277_p13 = por %p276_p12, %p275_p11 }
  0x22   :  { %200 = vmatpush3.msra.mxu0 %v50_v2  ;;  %221 = vmatpush3.msra.mxu1 %v50_v2 }
  0x23   :  { %201 = vmatprep.subr.mxu0 %v49_v3  ;;  %216 = vmatprep.subr.mxu1 %v49_v3  ;;  %p278_p0 = pnand %p277_p13, %p271_p10 }
  0x24   :  { %202 = vmatpush3.msra.mxu0 %v49_v3  ;;  %222 = vmatpush3.msra.mxu1 %v49_v3 }
  0x25   :  { %203 = vmatprep.subr.mxu0 %v48_v4  ;;  %217 = vmatprep.subr.mxu1 %v48_v4 }
  0x26   :  { %204 = vmatpush3.msra.mxu0 %v48_v4  ;;  %223 = vmatpush3.msra.mxu1 %v48_v4 }
  0x27   :  { %205 = vmatprep.subr.mxu0 %v47_v5  ;;  %218 = vmatprep.subr.mxu1 %v47_v5 }
  0x28   :  { %206 = vmatpush3.msra.mxu0 %v47_v5  ;;  %224 = vmatpush3.msra.mxu1 %v47_v5 }
  0x29   :  { %207 = vmatprep.mubr.msk.f32.mxu0 %vm60_vm0, %v43_v6  ;;  %210 = vmatprep.mubr.msk.f32.mxu1 %vm60_vm0, %v45_v7 }
  0x2a   :  { %208 = vmatmul.mubr.msk.f32.vlgmr.msra.gmra.mxu0 %vm60_vm0, %v44_v8  ;;  %211 = vmatmul.mubr.msk.f32.vlgmr.msra.gmra.mxu1 %vm60_vm0, %v46_v9 }
  0xea   :  { %v209_v11 = vpop.f32.mrf.mxu0  ;;  %v212_v12 = vpop.f32.mrf.mxu1 }
  0xeb   :  { %v145_v13 = vadd.f32 %v209_v11, %v180_v10  ;;  %v155_v14 = vadd.f32 %v212_v12, %v180_v10 }
  0xec   :  { %v139_v15 = vpop.f32.mrf.mxu0  ;;  %v149_v16 = vpop.f32.mrf.mxu1 }
  0xed   :  { %159 = vst [vmem:[#allocation7 + $0x8] sm:$0xff] %v145_v13  ;;  %161 = vst [vmem:[#allocation7 + $0x18] sm:$0xff] %v155_v14  ;;  %v140_v17 = vadd.f32 %v180_v10, %v139_v15  ;;  %v150_v18 = vadd.f32 %v180_v10, %v149_v16 }
  0xef   :  { %158 = vst [vmem:[#allocation7] sm:$0xff] %v140_v17  ;;  %160 = vst [vmem:[#allocation7 + $0x10] sm:$0xff] %v150_v18 }
  0xf0   :  { %281 = shalt.err (!%p278_p0)
}
  0xf1   :  { %173 = dma.vmem_to_hbm [thread:$0]  %s168_s25, 512, %s345_s3, [#allocation4], %s297_s15, %s297_s15, %s298_s16  }
  0xf2   :  { %294 = dma.done.wait [#allocation4], 512  }
  0xf3   :  { %295 = vsyncadd [#allocation4], 4294966784 }
  0xf4   :  { %177 = vsyncpa [#allocation3], 1 }
  0xf5   :  { %178 = vsyncpa [#allocation6], 1 }
  0xf6   :  { %179 = vsyncpa [#allocation4], 1 }

</bundles_post_ra>
